<compile_context>
chip_gen: v7x
topology: tpu7x:2x2x1
jax: 0.10.0
libtpu: 0.0.40
codegen_flags: <defaults>
</compile_context>

<pallas_src>
import jax
import jax.numpy as jnp
from jax.experimental import pallas as pl
from jax.experimental.pallas import tpu as pltpu

IN_DIM = 32 * 32      # 1024, already a multiple of 128
H1, H2, OUT = 58, 33, 10
PAD = 128             # lane width: pad all feature dims to this


def _round_up(x, m):
    return (x + m - 1) // m * m


def mlp_kernel(x_ref, w1_ref, b1_ref, w2_ref, b2_ref, w3_ref, b3_ref, o_ref):
    # Cast the activation tile to bf16 for native-rate MXU; accumulate in f32.
    # (If x is already bf16 the cast is a no-op.)
    x = x_ref[...].astype(jnp.bfloat16)
    # Layer 1: (TB,1024) @ (1024,128) + (1,128), ReLU  (pad lanes stay 0)
    h1 = jnp.dot(x, w1_ref[...], preferred_element_type=jnp.float32)
    h1 = jnp.maximum(h1 + b1_ref[...], 0.0).astype(jnp.bfloat16)
    # Layer 2: (TB,128) @ (128,128) + (1,128), ReLU
    h2 = jnp.dot(h1, w2_ref[...], preferred_element_type=jnp.float32)
    h2 = jnp.maximum(h2 + b2_ref[...], 0.0).astype(jnp.bfloat16)
    # Layer 3: (TB,128) @ (128,128) + (1,128)
    out = jnp.dot(h2, w3_ref[...], preferred_element_type=jnp.float32)
    o_ref[...] = (out + b3_ref[...]).astype(o_ref.dtype)


def init_params(key):
    """Torch-equivalent shapes (weights stored transposed: (in, out)), f32."""
    k1, k2, k3, k4, k5, k6 = jax.random.split(key, 6)

    def linear_init(kw, kb, fan_in, fan_out):
        # mimic torch.nn.Linear default init: U(-1/sqrt(fan_in), 1/sqrt(fan_in))
        bound = 1.0 / jnp.sqrt(jnp.float32(fan_in))
        w = jax.random.uniform(kw, (fan_in, fan_out), jnp.float32, -bound, bound)
        b = jax.random.uniform(kb, (1, fan_out), jnp.float32, -bound, bound)
        return w, b

    w1, b1 = linear_init(k1, k2, IN_DIM, H1)
    w2, b2 = linear_init(k3, k4, H1, H2)
    w3, b3 = linear_init(k5, k6, H2, OUT)
    return (w1, b1, w2, b2, w3, b3)


def prepare_params(params):
    """Zero-pad feature dims to 128 once. Weights -> bf16 (MXU operands),
    biases stay f32 (added onto the f32 accumulator, negligible size)."""
    w1, b1, w2, b2, w3, b3 = params

    def pad_to(a, shape):
        return jnp.pad(a, [(0, t - s) for s, t in zip(a.shape, shape)])

    w1p = pad_to(w1, (IN_DIM, PAD)).astype(jnp.bfloat16)   # (1024, 128)
    b1p = pad_to(b1, (1, PAD))                              # (1, 128) f32, pad = 0
    w2p = pad_to(w2, (PAD, PAD)).astype(jnp.bfloat16)       # zero rows for pad inputs
    b2p = pad_to(b2, (1, PAD))
    w3p = pad_to(w3, (PAD, PAD)).astype(jnp.bfloat16)
    b3p = pad_to(b3, (1, PAD))
    return (w1p, b1p, w2p, b2p, w3p, b3p)


def custom_mlp_forward(img, padded_params, *, tb_max=None):
    """img: (B, 1, 32, 32) in f32 or bf16 (NCHW). Returns (B, 10) f32 logits.

    Supplying img already in bf16 halves the dominant HBM read inside the
    kernel; f32 input is also accepted (cast to bf16 happens in-kernel, VPU).
    """
    w1, b1, w2, b2, w3, b3 = padded_params
    B = img.shape[0]
    x = img.reshape(B, IN_DIM)                # glue: flatten outside kernel
    if x.dtype != jnp.bfloat16:
        x = x.astype(jnp.float32)

    if tb_max is None:
        tb_max = 2048 if x.dtype == jnp.bfloat16 else 1024

    # Batch tile: multiple of 16 (bf16 sublane packing); capped at ceil(B/2)
    # so the "parallel" batch axis gives >= 2 tiles when B allows (keeps both
    # v7x TensorCores busy). No batch padding: Pallas masks the partial tile.
    TB = min(tb_max, max(16, _round_up(pl.cdiv(B, 2), 16)))
    grid = (pl.cdiv(B, TB),)

    x_spec = pl.BlockSpec((TB, IN_DIM), lambda i: (i, 0))
    # Weights/biases: constant index map -> DMA'd once, VMEM-resident.
    const2 = lambda a: pl.BlockSpec(a.shape, lambda i: (0, 0))
    out_spec = pl.BlockSpec((TB, PAD), lambda i: (i, 0))

    out_padded = pl.pallas_call(
        mlp_kernel,
        out_shape=jax.ShapeDtypeStruct((B, PAD), jnp.bfloat16),
        grid=grid,
        in_specs=[x_spec, const2(w1), const2(b1), const2(w2), const2(b2),
                  const2(w3), const2(b3)],
        out_specs=out_spec,
        compiler_params=pltpu.CompilerParams(
            dimension_semantics=("parallel",),
            vmem_limit_bytes=32 * 1024 * 1024),
    )(x, w1, b1, w2, b2, w3, b3)

    return out_padded[:, :OUT].astype(jnp.float32)


def reference_forward(img, params):
    w1, b1, w2, b2, w3, b3 = params
    x = img.reshape(img.shape[0], IN_DIM).astype(jnp.float32)
    h1 = jnp.maximum(x @ w1 + b1, 0.0)
    h2 = jnp.maximum(h1 @ w2 + b2, 0.0)
    return h2 @ w3 + b3


if __name__ == "__main__":
    key = jax.random.PRNGKey(0)
    k_img, k_img2, k_params = jax.random.split(key, 3)

    params = init_params(k_params)
    padded_params = prepare_params(params)

    # Small f32 batch (NCHW (B,1,32,32)): single partial tile.
    img = jax.random.normal(k_img, (2, 1, 32, 32), dtype=jnp.float32)
    out = jax.block_until_ready(custom_mlp_forward(img, padded_params))
    ref = reference_forward(img, params)
    assert out.shape == (2, 10)
    assert jnp.allclose(out, ref, atol=2e-2, rtol=2e-2), \
        float(jnp.max(jnp.abs(out - ref)))

    # Larger bf16 batch: multi-tile grid with a partial last tile
    # (300 = 2*128 + 44), exercising the halved-HBM bf16 input path.
    img2 = jax.random.normal(k_img2, (300, 1, 32, 32),
                             dtype=jnp.float32).astype(jnp.bfloat16)
    out2 = jax.block_until_ready(
        custom_mlp_forward(img2, padded_params, tb_max=128))
    ref2 = reference_forward(img2.astype(jnp.float32), params)
    assert out2.shape == (300, 10)
    assert jnp.allclose(out2, ref2, atol=2e-2, rtol=2e-2), \
        float(jnp.max(jnp.abs(out2 - ref2)))

    print("KERNEL_OK")
</pallas_src>

<mosaic_0001>
module attributes {stable_mosaic.version = 11 : i64} {
  func.func @mlp_kernel(%arg0: i32, %arg1: memref<16x1024xf32, #tpu.memory_space<vmem>>, %arg2: memref<1024x128xbf16, #tpu.memory_space<vmem>>, %arg3: memref<1x128xf32, #tpu.memory_space<vmem>>, %arg4: memref<128x128xbf16, #tpu.memory_space<vmem>>, %arg5: memref<1x128xf32, #tpu.memory_space<vmem>>, %arg6: memref<128x128xbf16, #tpu.memory_space<vmem>>, %arg7: memref<1x128xf32, #tpu.memory_space<vmem>>, %arg8: memref<16x128xbf16, #tpu.memory_space<vmem>>) attributes {dimension_semantics = [#tpu.dimension_semantics<parallel>], iteration_bounds = array<i64: 1>, scalar_prefetch = 0 : i64, scratch_operands = 0 : i64, tpu.core_type = #tpu.core_type<tc>, window_params = [{transform_indices = @transform_0, window_bounds = array<i64: 16, 1024>}, {pipeline_mode = #tpu.pipeline_mode<synchronous>, transform_indices = @transform_1, window_bounds = array<i64: 1024, 128>}, {pipeline_mode = #tpu.pipeline_mode<synchronous>, transform_indices = @transform_2, window_bounds = array<i64: 1, 128>}, {pipeline_mode = #tpu.pipeline_mode<synchronous>, transform_indices = @transform_3, window_bounds = array<i64: 128, 128>}, {pipeline_mode = #tpu.pipeline_mode<synchronous>, transform_indices = @transform_4, window_bounds = array<i64: 1, 128>}, {pipeline_mode = #tpu.pipeline_mode<synchronous>, transform_indices = @transform_5, window_bounds = array<i64: 128, 128>}, {pipeline_mode = #tpu.pipeline_mode<synchronous>, transform_indices = @transform_6, window_bounds = array<i64: 1, 128>}, {transform_indices = @transform_7, window_bounds = array<i64: 16, 128>}]} {
    %c0 = arith.constant 0 : index
    %c0_0 = arith.constant 0 : index
    %0 = vector.load %arg1[%c0, %c0_0] : memref<16x1024xf32, #tpu.memory_space<vmem>>, vector<16x1024xf32>
    %1 = arith.truncf %0 : vector<16x1024xf32> to vector<16x1024xbf16>
    %c0_1 = arith.constant 0 : index
    %c0_2 = arith.constant 0 : index
    %2 = vector.load %arg2[%c0_1, %c0_2] : memref<1024x128xbf16, #tpu.memory_space<vmem>>, vector<1024x128xbf16>
    %cst = arith.constant dense<0.000000e+00> : vector<16x128xf32>
    %3 = tpu.matmul %1, %2, %cst {dimension_numbers = #tpu.dot_dimension_numbers<[1], [0], [0], [1], [0, 0, 1, 1], [], []>} : vector<16x1024xbf16>, vector<1024x128xbf16>, vector<16x128xf32> -> vector<16x128xf32>
    %c0_3 = arith.constant 0 : index
    %c0_4 = arith.constant 0 : index
    %4 = vector.load %arg3[%c0_3, %c0_4] : memref<1x128xf32, #tpu.memory_space<vmem>>, vector<1x128xf32>
    %5 = vector.broadcast %4 : vector<1x128xf32> to vector<16x128xf32>
    %6 = arith.addf %3, %5 : vector<16x128xf32>
    %cst_5 = arith.constant 0.000000e+00 : f32
    %7 = vector.broadcast %cst_5 : f32 to vector<16x128xf32>
    %8 = arith.maximumf %6, %7 : vector<16x128xf32>
    %9 = arith.truncf %8 : vector<16x128xf32> to vector<16x128xbf16>
    %c0_6 = arith.constant 0 : index
    %c0_7 = arith.constant 0 : index
    %10 = vector.load %arg4[%c0_6, %c0_7] : memref<128x128xbf16, #tpu.memory_space<vmem>>, vector<128x128xbf16>
    %cst_8 = arith.constant dense<0.000000e+00> : vector<16x128xf32>
    %11 = tpu.matmul %9, %10, %cst_8 {dimension_numbers = #tpu.dot_dimension_numbers<[1], [0], [0], [1], [0, 0, 1, 1], [], []>} : vector<16x128xbf16>, vector<128x128xbf16>, vector<16x128xf32> -> vector<16x128xf32>
    %c0_9 = arith.constant 0 : index
    %c0_10 = arith.constant 0 : index
    %12 = vector.load %arg5[%c0_9, %c0_10] : memref<1x128xf32, #tpu.memory_space<vmem>>, vector<1x128xf32>
    %13 = vector.broadcast %12 : vector<1x128xf32> to vector<16x128xf32>
    %14 = arith.addf %11, %13 : vector<16x128xf32>
    %cst_11 = arith.constant 0.000000e+00 : f32
    %15 = vector.broadcast %cst_11 : f32 to vector<16x128xf32>
    %16 = arith.maximumf %14, %15 : vector<16x128xf32>
    %17 = arith.truncf %16 : vector<16x128xf32> to vector<16x128xbf16>
    %c0_12 = arith.constant 0 : index
    %c0_13 = arith.constant 0 : index
    %18 = vector.load %arg6[%c0_12, %c0_13] : memref<128x128xbf16, #tpu.memory_space<vmem>>, vector<128x128xbf16>
    %cst_14 = arith.constant dense<0.000000e+00> : vector<16x128xf32>
    %19 = tpu.matmul %17, %18, %cst_14 {dimension_numbers = #tpu.dot_dimension_numbers<[1], [0], [0], [1], [0, 0, 1, 1], [], []>} : vector<16x128xbf16>, vector<128x128xbf16>, vector<16x128xf32> -> vector<16x128xf32>
    %c0_15 = arith.constant 0 : index
    %c0_16 = arith.constant 0 : index
    %20 = vector.load %arg7[%c0_15, %c0_16] : memref<1x128xf32, #tpu.memory_space<vmem>>, vector<1x128xf32>
    %21 = vector.broadcast %20 : vector<1x128xf32> to vector<16x128xf32>
    %22 = arith.addf %19, %21 : vector<16x128xf32>
    %23 = arith.truncf %22 : vector<16x128xf32> to vector<16x128xbf16>
    %c0_17 = arith.constant 0 : index
    %c0_18 = arith.constant 0 : index
    %24 = vector.load %arg8[%c0_17, %c0_18] : memref<16x128xbf16, #tpu.memory_space<vmem>>, vector<16x128xbf16>
    tpu.vector_store %arg8[%c0_17, %c0_18], %23 {strides = array<i32>} : memref<16x128xbf16, #tpu.memory_space<vmem>>, vector<16x128xbf16>,
    return
  }
  func.func @transform_0(%arg0: i32) -> (i32, i32) {
    %c0_i32 = arith.constant 0 : i32
    %c0_i32_0 = arith.constant 0 : i32
    return %arg0, %c0_i32 : i32, i32
  }
  func.func @transform_1(%arg0: i32) -> (i32, i32) {
    %c0_i32 = arith.constant 0 : i32
    %c0_i32_0 = arith.constant 0 : i32
    %c0_i32_1 = arith.constant 0 : i32
    return %c0_i32, %c0_i32_0 : i32, i32
  }
  func.func @transform_2(%arg0: i32) -> (i32, i32) {
    %c0_i32 = arith.constant 0 : i32
    %c0_i32_0 = arith.constant 0 : i32
    %c0_i32_1 = arith.constant 0 : i32
    return %c0_i32, %c0_i32_0 : i32, i32
  }
  func.func @transform_3(%arg0: i32) -> (i32, i32) {
    %c0_i32 = arith.constant 0 : i32
    %c0_i32_0 = arith.constant 0 : i32
    %c0_i32_1 = arith.constant 0 : i32
    return %c0_i32, %c0_i32_0 : i32, i32
  }
  func.func @transform_4(%arg0: i32) -> (i32, i32) {
    %c0_i32 = arith.constant 0 : i32
    %c0_i32_0 = arith.constant 0 : i32
    %c0_i32_1 = arith.constant 0 : i32
    return %c0_i32, %c0_i32_0 : i32, i32
  }
  func.func @transform_5(%arg0: i32) -> (i32, i32) {
    %c0_i32 = arith.constant 0 : i32
    %c0_i32_0 = arith.constant 0 : i32
    %c0_i32_1 = arith.constant 0 : i32
    return %c0_i32, %c0_i32_0 : i32, i32
  }
  func.func @transform_6(%arg0: i32) -> (i32, i32) {
    %c0_i32 = arith.constant 0 : i32
    %c0_i32_0 = arith.constant 0 : i32
    %c0_i32_1 = arith.constant 0 : i32
    return %c0_i32, %c0_i32_0 : i32, i32
  }
  func.func @transform_7(%arg0: i32) -> (i32, i32) {
    %c0_i32 = arith.constant 0 : i32
    %c0_i32_0 = arith.constant 0 : i32
    return %arg0, %c0_i32 : i32, i32
  }
}

</mosaic_0001>

<bundles_post_ra>
// kernel: tpu_custom_call.1
= control target key start
LH: loop header
LB: loop body
LE: loop exit
PB: predicated region body
PF: predicated region fallthrough
CT: control target
= control target key end

     0   :  { %12 = vsyncpa [#allocation3], 0  ;;  %s1934_s0 = inlined_call_operand.hbm [shape: f32[2,1024], index: 0, kind: input, shape index: {}]   ;;  %s1935_s1 = inlined_call_operand.hbm [shape: bf16[1024,128], index: 1, kind: input, shape index: {}]   ;;  %s1936_s2 = inlined_call_operand.vmem [shape: f32[1,128], index: 2, kind: input, shape index: {}]   ;;  %s1937_s3 = inlined_call_operand.hbm [shape: bf16[128,128], index: 3, kind: input, shape index: {}]   ;;  %s1938_s4 = inlined_call_operand.vmem [shape: f32[1,128], index: 4, kind: input, shape index: {}]   ;;  %s1939_s5 = inlined_call_operand.hbm [shape: bf16[128,128], index: 5, kind: input, shape index: {}]   ;;  %s1940_s6 = inlined_call_operand.vmem [shape: f32[1,128], index: 6, kind: input, shape index: {}]   ;;  %s1941_s7 = inlined_call_operand.hbm [shape: bf16[2,128], index: 7, kind: output, shape index: {}]  }
   0x1   :  { %13 = vsyncpa [#allocation6], 0 }
   0x2   :  { %14 = vsyncpa [#allocation9], 0 }
   0x3   :  { %15 = vsyncpa [#allocation4], 0 }
   0x4   :  { %20 = vsyncadd [#allocation3], 1792  ;;  %s1752_s24 = smov [#allocation5]   ;;  %s1634_s28 = scalar_lea.hbm %s1935_s1, 8192 }
   0x5   :  { %s33_s25 = sshll.u32 %s1752_s24, 4  ;;  %p1635_p0 = scmp.ne.s32.totalorder %s1935_s1, %s1634_s28  ;;  %s34_s25 = int_to_ptr.vmem [resolvable:$true] %s33_s25 }
   0x6   :  { %p1638_p1 = scmp.lt.u32.totalorder %s1634_s28, %s1935_s1 }
   0x8   :  { %p1640_p2 = pnand %p1638_p1, %p1635_p0 }
   0xa   :  { %1643 = shalt.err (!%p1640_p2)
}
   0xb   :  { %s1644_s10 = scalar_lea.vmem %s34_s25, 8192  ;;  %p1649_p4 = scmp.lt.s32.totalorder %s34_s25, %s34_s25 }
   0xc   :  { %p1645_p3 = scmp.ne.s32.totalorder %s34_s25, %s1644_s10  ;;  %p1650_p5 = scmp.lt.s32.totalorder %s1644_s10, %s1644_s10 }
   0xe   :  { %p1651_p6 = por %p1650_p5, %p1649_p4 }
  0x10   :  { %p1652_p7 = pnand %p1651_p6, %p1645_p3 }
  0x12   :  { %1655 = shalt.err (!%p1652_p7)
}
  0x13   :  { %s1753_s11 = smov 64   ;;  %s1754_s12 = smov 4  }
  0x14   :  { %39 = dma.hbm_to_vmem [thread:$0]  %s1935_s1, 8192, %s34_s25, [#allocation6], %s1753_s11, %s1753_s11, %s1754_s12  }
  0x15   :  { %s1755_s15 = smov [#allocation2]   ;;  %s1656_s19 = scalar_lea.hbm %s1934_s0, 256 }
  0x16   :  { %s21_s16 = sshll.u32 %s1755_s15, 4  ;;  %p1657_p8 = scmp.ne.s32.totalorder %s1934_s0, %s1656_s19  ;;  %s22_s16 = int_to_ptr.vmem [resolvable:$true] %s21_s16 }
  0x17   :  { %p1660_p9 = scmp.lt.u32.totalorder %s1656_s19, %s1934_s0 }
  0x19   :  { %p1662_p10 = pnand %p1660_p9, %p1657_p8 }
  0x1b   :  { %1665 = shalt.err (!%p1662_p10)
}
  0x1c   :  { %s1666_s24 = scalar_lea.vmem %s22_s16, 256  ;;  %s1670_s1 = scalar_lea.vmem %s22_s16, 2048 }
  0x1d   :  { %p1667_p11 = scmp.ne.s32.totalorder %s22_s16, %s1666_s24  ;;  %p1671_p12 = scmp.lt.s32.totalorder %s22_s16, %s22_s16 }
  0x1e   :  { %p1672_p13 = scmp.lt.s32.totalorder %s1670_s1, %s1666_s24 }
  0x20   :  { %p1673_p0 = por %p1672_p13, %p1671_p12 }
  0x22   :  { %p1674_p1 = pnand %p1673_p0, %p1667_p11 }
  0x24   :  { %1677 = shalt.err (!%p1674_p1)
}
  0x25   :  { %s1756_s25 = smov 256   ;;  %s1757_s26 = smov 16  }
  0x26   :  { %27 = dma.hbm_to_vmem [thread:$0]  %s1934_s0, 256, %s22_s16, [#allocation3], %s1756_s25, %s1756_s25, %s1757_s26  }
  0x27   :  { %s1758_s29 = smov [#allocation7]   ;;  %s1759_s8 = smov [#allocation8]  }
  0x28   :  { %s47_s30 = sshll.u32 %s1758_s29, 4  ;;  %s61_s9 = sshll.u32 %s1759_s8, 4  ;;  %s48_s30 = int_to_ptr.vmem [resolvable:$true] %s47_s30  ;;  %s1834_s9 = int_to_ptr.vmem [resolvable:$true] %s61_s9 }
  0x29   :  { %s1678_s14 = scalar_lea.hbm %s1937_s3, 1024 }
  0x2a   :  { %p1679_p2 = scmp.ne.s32.totalorder %s1937_s3, %s1678_s14  ;;  %p1682_p3 = scmp.lt.u32.totalorder %s1678_s14, %s1937_s3 }
  0x2c   :  { %p1684_p4 = pnand %p1682_p3, %p1679_p2 }
  0x2e   :  { %1687 = shalt.err (!%p1684_p4)
}
  0x2f   :  { %s1688_s0 = scalar_lea.vmem %s48_s30, 1024  ;;  %p1693_p6 = scmp.lt.s32.totalorder %s48_s30, %s48_s30 }
  0x30   :  { %p1689_p5 = scmp.ne.s32.totalorder %s48_s30, %s1688_s0  ;;  %p1694_p7 = scmp.lt.s32.totalorder %s1688_s0, %s1688_s0 }
  0x32   :  { %p1695_p8 = por %p1694_p7, %p1693_p6 }
  0x34   :  { %p1696_p9 = pnand %p1695_p8, %p1689_p5 }
  0x36   :  { %1699 = shalt.err (!%p1696_p9)
}
  0x37   :  { %53 = dma.hbm_to_vmem [thread:$0]  %s1937_s3, 1024, %s48_s30, [#allocation6], %s1753_s11, %s1753_s11, %s1754_s12  }
  0x38   :  { %s1700_s23 = scalar_lea.hbm %s1939_s5, 1024 }
  0x39   :  { %p1701_p10 = scmp.ne.s32.totalorder %s1939_s5, %s1700_s23  ;;  %p1704_p11 = scmp.lt.u32.totalorder %s1700_s23, %s1939_s5 }
  0x3b   :  { %p1706_p12 = pnand %p1704_p11, %p1701_p10 }
  0x3d   :  { %1709 = shalt.err (!%p1706_p12)
}
  0x3e   :  { %s1710_s28 = scalar_lea.vmem %s1834_s9, 1024  ;;  %p1715_p0 = scmp.lt.s32.totalorder %s1834_s9, %s1834_s9 }
  0x3f   :  { %p1711_p13 = scmp.ne.s32.totalorder %s1834_s9, %s1710_s28  ;;  %p1716_p1 = scmp.lt.s32.totalorder %s1710_s28, %s1710_s28 }
  0x41   :  { %p1717_p2 = por %p1716_p1, %p1715_p0 }
  0x43   :  { %p1718_p3 = pnand %p1717_p2, %p1711_p13 }
  0x45   :  { %1721 = shalt.err (!%p1718_p3)
}
  0x46   :  { %67 = dma.hbm_to_vmem [thread:$0]  %s1939_s5, 1024, %s1834_s9, [#allocation9], %s1753_s11, %s1753_s11, %s1754_s12  }
  0x47   :  { %1744 = dma.done.wait [#allocation3], 2048  }
  0x48   :  { %1745 = vsyncadd [#allocation3], 4294965248 }
  0x49   :  { %1746 = dma.done.wait [#allocation6], 9216  }
  0x4a   :  { %1747 = vsyncadd [#allocation6], 4294958080 }
  0x4b   :  { %1748 = dma.done.wait [#allocation9], 1024  }
  0x4c   :  { %1749 = vsyncadd [#allocation9], 4294966272  ;;  %v1530_v0 = vld [vmem:[#allocation5 + $0x40] sm:$0xff]   ;;  %v1534_v4 = vld [vmem:[#allocation5 + $0x48] sm:$0xff]   ;;  %v1760_v25 = vmov 1983009808   ;;  %v122_v27 = vlaneseq }
  0x4d   :  { %v1531_v1 = vld [vmem:[#allocation5 + $0xc0] sm:$0xff]   ;;  %1370 = vmatprep.subr.bf16.mxu0 %v1530_v0  ;;  %v1535_v5 = vld [vmem:[#allocation5 + $0xc8] sm:$0xff]   ;;  %v1538_v8 = vld [vmem:[#allocation5 + $0x50] sm:$0xff]   ;;  %v120_v26 = vunpack.c.l.s4 %v1760_v25  ;;  %vm1762_vm0 = vmmov 0  }
  0x4e   :  { %v1532_v2 = vld [vmem:[#allocation5] sm:$0xff]   ;;  %1392 = vmatprep.subr.bf16.mxu1 %v1531_v1  ;;  %v1536_v6 = vld [vmem:[#allocation5 + $0x8] sm:$0xff]   ;;  %v1539_v9 = vld [vmem:[#allocation5 + $0xd0] sm:$0xff]   ;;  %v1871_v33 = vshrl.u32 %v122_v27, 7 }
  0x4f   :  { %v1533_v3 = vld [vmem:[#allocation5 + $0x80] sm:$0xff]   ;;  %1371 = vmatpush3.bf16.msra.mxu0 %v1532_v2  ;;  %v1537_v7 = vld [vmem:[#allocation5 + $0x88] sm:$0xff]   ;;  %v1540_v10 = vld [vmem:[#allocation5 + $0x10] sm:$0xff]   ;;  %v121_v32 = vunpack.c.0.s8 %v120_v26 }
  0x50   :  { %1393 = vmatpush3.bf16.msra.mxu1 %v1533_v3  ;;  %1372 = vmatprep.subr.bf16.mxu0 %v1534_v4  ;;  %v1541_v11 = vld [vmem:[#allocation5 + $0x90] sm:$0xff]   ;;  %v1542_v12 = vld [vmem:[#allocation5 + $0x58] sm:$0xff]   ;;  %v1546_v16 = vld [vmem:[#allocation5 + $0x60] sm:$0xff]  }
  0x51   :  { %1394 = vmatprep.subr.bf16.mxu1 %v1535_v5  ;;  %v1543_v13 = vld [vmem:[#allocation5 + $0xd8] sm:$0xff]   ;;  %v1547_v17 = vld [vmem:[#allocation5 + $0xe0] sm:$0xff]   ;;  %v1550_v20 = vld [vmem:[#allocation5 + $0x68] sm:$0xff]   ;;  %v1874_v37 = vsub.s32 %v121_v32, %v1871_v33 }
  0x52   :  { %v1544_v14 = vld [vmem:[#allocation5 + $0x18] sm:$0xff]   ;;  %v1548_v18 = vld [vmem:[#allocation5 + $0x20] sm:$0xff]   ;;  %v1551_v21 = vld [vmem:[#allocation5 + $0xe8] sm:$0xff]  }
  0x53   :  { %1373 = vmatpush3.bf16.msra.mxu0 %v1536_v6  ;;  %v1545_v15 = vld [vmem:[#allocation5 + $0x98] sm:$0xff]   ;;  %v1549_v19 = vld [vmem:[#allocation5 + $0xa0] sm:$0xff]   ;;  %v1552_v22 = vld [vmem:[#allocation5 + $0x28] sm:$0xff]  }
  0x54   :  { %1395 = vmatpush3.bf16.msra.mxu1 %v1537_v7  ;;  %1374 = vmatprep.subr.bf16.mxu0 %v1538_v8  ;;  %v1553_v23 = vld [vmem:[#allocation5 + $0xa8] sm:$0xff]   ;;  %v1554_v24 = vld [vmem:[#allocation5 + $0x70] sm:$0xff]   ;;  %v1558_v31 = vld [vmem:[#allocation5 + $0x78] sm:$0xff]  }
  0x55   :  { %1396 = vmatprep.subr.bf16.mxu1 %v1539_v9  ;;  %v1555_v28 = vld [vmem:[#allocation5 + $0xf0] sm:$0xff]   ;;  %v1559_v34 = vld [vmem:[#allocation5 + $0xf8] sm:$0xff]   ;;  %v1574_v53 = vld [vmem:[#allocation5 + $0x140] sm:$0xff]  }
  0x56   :  { %v1556_v29 = vld [vmem:[#allocation5 + $0x30] sm:$0xff]   ;;  %v1560_v35 = vld [vmem:[#allocation5 + $0x38] sm:$0xff]   ;;  %v1575_v58 = vld [vmem:[#allocation5 + $0x1c0] sm:$0xff]  }
  0x57   :  { %1375 = vmatpush3.bf16.msra.mxu0 %v1540_v10  ;;  %v1557_v30 = vld [vmem:[#allocation5 + $0xb0] sm:$0xff]   ;;  %v1561_v36 = vld [vmem:[#allocation5 + $0xb8] sm:$0xff]   ;;  %v1576_v62 = vld [vmem:[#allocation5 + $0x100] sm:$0xff]  }
  0x58   :  { %1397 = vmatpush3.bf16.msra.mxu1 %v1541_v11  ;;  %1376 = vmatprep.subr.bf16.mxu0 %v1542_v12  ;;  %v1562_v38 = vld [vmem:[#allocation2] ss:$16 sps:$4 sm:$0xff]   ;;  %v1570_v43 = vld [vmem:[#allocation2 + $0x4] ss:$16 sps:$4 sm:$0xff]   ;;  %v1578_v4 = vld [vmem:[#allocation5 + $0x148] sm:$0xff]  }
  0x59   :  { %1398 = vmatprep.subr.bf16.mxu1 %v1543_v13  ;;  %v1564_v39 = vld [vmem:[#allocation2 + $0x20] ss:$16 sps:$4 sm:$0xff]   ;;  %v125_v42 = vrot.slane %v1562_v38, %v1874_v37  ;;  %v1571_v44 = vld [vmem:[#allocation2 + $0x24] ss:$16 sps:$4 sm:$0xff]   ;;  %v132_v50 = vrot.slane %v1570_v43, %v1874_v37  ;;  %v1579_v7 = vld [vmem:[#allocation5 + $0x1c8] sm:$0xff]  }
  0x5a   :  { %v1566_v40 = vld [vmem:[#allocation2 + $0x40] ss:$16 sps:$4 sm:$0xff]   ;;  %v1572_v45 = vld [vmem:[#allocation2 + $0x44] ss:$16 sps:$4 sm:$0xff]   ;;  %v139_v46 = vrot.slane %v1564_v39, %v1874_v37  ;;  %v146_v51 = vrot.slane %v1571_v44, %v1874_v37  ;;  %v1580_v8 = vld [vmem:[#allocation5 + $0x108] sm:$0xff]  }
  0x5b   :  { %1377 = vmatpush3.bf16.msra.mxu0 %v1544_v14  ;;  %v1568_v41 = vld [vmem:[#allocation2 + $0x60] ss:$16 sps:$4 sm:$0xff]   ;;  %v197_v47 = vrot.slane %v1566_v40, %v1874_v37  ;;  %v1573_v49 = vld [vmem:[#allocation2 + $0x64] ss:$16 sps:$4 sm:$0xff]   ;;  %v204_v52 = vrot.slane %v1572_v45, %v1874_v37  ;;  %v1581_v9 = vld [vmem:[#allocation5 + $0x188] sm:$0xff]  }
  0x5c   :  { %1399 = vmatpush3.bf16.msra.mxu1 %v1545_v15  ;;  %1378 = vmatprep.subr.bf16.mxu0 %v1546_v16  ;;  %v211_v48 = vrot.slane %v1568_v41, %v1874_v37  ;;  %v148_v54 = vcombine.high %v125_v42, %v139_v46  ;;  %v218_v56 = vrot.slane %v1573_v49, %v1874_v37  ;;  %v1577_v2 = vld [vmem:[#allocation5 + $0x180] sm:$0xff]   ;;  %v1582_v10 = vld [vmem:[#allocation5 + $0x150] sm:$0xff]   ;;  %v1586_v14 = vld [vmem:[#allocation5 + $0x158] sm:$0xff]  }
  0x5d   :  { %1400 = vmatprep.subr.bf16.mxu1 %v1547_v17  ;;  %v147_v57 = vcombine.low %v125_v42, %v139_v46  ;;  %v150_v59 = vcombine.high %v132_v50, %v146_v51  ;;  %v149_v61 = vcombine.low %v132_v50, %v146_v51  ;;  %v1583_v11 = vld [vmem:[#allocation5 + $0x1d0] sm:$0xff]   ;;  %v1587_v15 = vld [vmem:[#allocation5 + $0x1d8] sm:$0xff]   ;;  %v1597_v25 = vld [vmem:[#allocation5 + $0x1a8] sm:$0xff]  }
  0x5e   :  { %v220_v55 = vcombine.high %v197_v47, %v211_v48  ;;  %v219_v60 = vcombine.low %v197_v47, %v211_v48  ;;  %v222_v0 = vcombine.high %v204_v52, %v218_v56  ;;  %v221_v1 = vcombine.low %v204_v52, %v218_v56  ;;  %v1584_v12 = vld [vmem:[#allocation5 + $0x110] sm:$0xff]   ;;  %v1588_v16 = vld [vmem:[#allocation5 + $0x118] sm:$0xff]  }
  0x5f   :  { %1379 = vmatpush3.bf16.msra.mxu0 %v1548_v18  ;;  %v1585_v13 = vld [vmem:[#allocation5 + $0x190] sm:$0xff]   ;;  %v1589_v17 = vld [vmem:[#allocation5 + $0x198] sm:$0xff]   ;;  %v1590_v18 = vld [vmem:[#allocation5 + $0x160] sm:$0xff]  }
  0x60   :  { %1401 = vmatpush3.bf16.msra.mxu1 %v1549_v19  ;;  %1380 = vmatprep.subr.bf16.mxu0 %v1550_v20  ;;  %v276_v63 = vpack.c.bf16 %v220_v55, %v148_v54  ;;  %v275_v3 = vpack.c.bf16 %v219_v60, %v147_v57  ;;  %v278_v5 = vpack.c.bf16 %v222_v0, %v150_v59  ;;  %v1591_v19 = vld [vmem:[#allocation5 + $0x1e0] sm:$0xff]   ;;  %v1598_v26 = vld [vmem:[#allocation5 + $0x170] sm:$0xff]   ;;  %v1604_v32 = vld [vmem:[#allocation5 + $0x138] sm:$0xff]  }
  0x61   :  { %1402 = vmatprep.subr.bf16.mxu1 %v1551_v21  ;;  %v277_v6 = vpack.c.bf16 %v221_v1, %v149_v61  ;;  %v1592_v20 = vld [vmem:[#allocation5 + $0x120] sm:$0xff]   ;;  %v1599_v27 = vld [vmem:[#allocation5 + $0x1f0] sm:$0xff]   ;;  %v1610_v38 = vld [vmem:[#allocation2 + $0x48] ss:$16 sps:$4 sm:$0xff]   ;;  %v1761_v1 = vmov 0.0  }
  0x62   :  { %834 = vmatprep.mubr.bf16.mxu0 %v276_v63  ;;  %875 = vmatprep.mubr.bf16.mxu1 %v278_v5  ;;  %v1593_v21 = vld [vmem:[#allocation5 + $0x1a0] sm:$0xff]   ;;  %v1612_v39 = vld [vmem:[#allocation2 + $0x68] ss:$16 sps:$4 sm:$0xff]   ;;  %v1614_v40 = vld [vmem:[#allocation2 + $0xc] ss:$16 sps:$4 sm:$0xff]   ;;  %v233_v44 = vrot.slane %v1610_v38, %v1874_v37 }
  0x63   :  { %1381 = vmatpush3.bf16.msra.mxu0 %v1552_v22  ;;  %v1594_v22 = vld [vmem:[#allocation5 + $0x168] sm:$0xff]   ;;  %v247_v47 = vrot.slane %v1612_v39, %v1874_v37  ;;  %v168_v48 = vrot.slane %v1614_v40, %v1874_v37  ;;  %v1618_v0 = vld [vmem:[#allocation7] sm:$0xff]  }
  0x64   :  { %1403 = vmatpush3.bf16.msra.mxu1 %v1553_v23  ;;  %1382 = vmatprep.subr.bf16.mxu0 %v1554_v24  ;;  %v1595_v23 = vld [vmem:[#allocation5 + $0x1e8] sm:$0xff]  }
  0x65   :  { %1404 = vmatprep.subr.bf16.mxu1 %v1555_v28  ;;  %v1596_v24 = vld [vmem:[#allocation5 + $0x128] sm:$0xff]   ;;  %v1600_v28 = vld [vmem:[#allocation5 + $0x130] sm:$0xff]   ;;  %v256_v54 = vcombine.high %v233_v44, %v247_v47  ;;  %v255_v56 = vcombine.low %v233_v44, %v247_v47 }
  0x66   :  { %v1615_v41 = vld [vmem:[#allocation2 + $0x2c] ss:$16 sps:$4 sm:$0xff]  }
  0x67   :  { %1383 = vmatpush3.bf16.msra.mxu0 %v1556_v29  ;;  %v1601_v29 = vld [vmem:[#allocation5 + $0x1b0] sm:$0xff]   ;;  %v1616_v45 = vld [vmem:[#allocation2 + $0x4c] ss:$16 sps:$4 sm:$0xff]   ;;  %v182_v49 = vrot.slane %v1615_v41, %v1874_v37 }
  0x68   :  { %1405 = vmatpush3.bf16.msra.mxu1 %v1557_v30  ;;  %1384 = vmatprep.subr.bf16.mxu0 %v1558_v31  ;;  %v1602_v30 = vld [vmem:[#allocation5 + $0x178] sm:$0xff]   ;;  %v240_v51 = vrot.slane %v1616_v45, %v1874_v37  ;;  %v1623_v5 = vld [vmem:[#allocation7 + $0x28] sm:$0xff]  }
  0x69   :  { %1406 = vmatprep.subr.bf16.mxu1 %v1559_v34  ;;  %v1603_v31 = vld [vmem:[#allocation5 + $0x1f8] sm:$0xff]   ;;  %v186_v55 = vcombine.high %v168_v48, %v182_v49  ;;  %v185_v57 = vcombine.low %v168_v48, %v182_v49 }
  0x6a   :  { %v1605_v34 = vld [vmem:[#allocation5 + $0x1b8] sm:$0xff]  }
  0x6b   :  { %1385 = vmatpush3.bf16.msra.mxu0 %v1560_v35  ;;  %v1606_v35 = vld [vmem:[#allocation2 + $0x8] ss:$16 sps:$4 sm:$0xff]   ;;  %v1617_v46 = vld [vmem:[#allocation2 + $0x6c] ss:$16 sps:$4 sm:$0xff]  }
  0x6c   :  { %1407 = vmatpush3.bf16.msra.mxu1 %v1561_v36  ;;  %1414 = vmatprep.subr.bf16.mxu0 %v1574_v53  ;;  %v1608_v36 = vld [vmem:[#allocation2 + $0x28] ss:$16 sps:$4 sm:$0xff]   ;;  %v161_v42 = vrot.slane %v1606_v35, %v1874_v37  ;;  %v254_v52 = vrot.slane %v1617_v46, %v1874_v37 }
  0x6d   :  { %1436 = vmatprep.subr.bf16.mxu1 %v1575_v58  ;;  %v175_v43 = vrot.slane %v1608_v36, %v1874_v37  ;;  %v1619_v37 = vld [vmem:[#allocation7 + $0x8] sm:$0xff]  }
  0x6e   :  { %835 = vmatmul.mubr.bf16.vlgmr.msra.gmra.mrb[0].mxu0 %v275_v3  ;;  %v258_v58 = vcombine.high %v240_v51, %v254_v52  ;;  %v257_v59 = vcombine.low %v240_v51, %v254_v52  ;;  %v1621_v3 = vld [vmem:[#allocation7 + $0x18] sm:$0xff]   ;;  %v1632_v52 = vld [vmem:[#allocation8 + $0x30] sm:$0xff]  }
  0x6f   :  { %1415 = vmatpush3.bf16.msra.mxu0 %v1576_v62  ;;  %876 = vmatmul.mubr.bf16.vlgmr.msra.gmra.mrb[0].mxu1 %v277_v6  ;;  %v184_v50 = vcombine.high %v161_v42, %v175_v43  ;;  %v183_v53 = vcombine.low %v161_v42, %v175_v43  ;;  %v1624_v6 = vld [vmem:[#allocation7 + $0x30] sm:$0xff]  }
  0x70   :  { %1416 = vmatprep.subr.bf16.mxu0 %v1578_v4  ;;  %1437 = vmatpush3.bf16.msra.mxu1 %v1577_v2  ;;  %v282_v62 = vpack.c.bf16 %v258_v58, %v186_v55  ;;  %v281_v63 = vpack.c.bf16 %v257_v59, %v185_v57  ;;  %v1620_v2 = vld [vmem:[#allocation7 + $0x10] sm:$0xff]   ;;  %v1622_v4 = vld [vmem:[#allocation7 + $0x20] sm:$0xff]  }
  0x71   :  { %1438 = vmatprep.subr.bf16.mxu1 %v1579_v7  ;;  %v280_v60 = vpack.c.bf16 %v256_v54, %v184_v50  ;;  %v279_v61 = vpack.c.bf16 %v255_v56, %v183_v53  ;;  %v1625_v7 = vld [vmem:[#allocation7 + $0x38] sm:$0xff]   ;;  %v1347_v54 = vld [vmem:[%s1938_s4] ss:$0 sm:$0xff] }
  0x72   :  { %957 = vmatprep.mubr.bf16.mxu1 %v282_v62  ;;  %v1633_v53 = vld [vmem:[#allocation8 + $0x38] sm:$0xff]  }
  0x73   :  { %1417 = vmatpush3.bf16.msra.mxu0 %v1580_v8  ;;  %916 = vmatprep.mubr.bf16.mxu0 %v280_v60  ;;  %v1626_v8 = vld [vmem:[#allocation8] sm:$0xff]  }
  0x74   :  { %1418 = vmatprep.subr.bf16.mxu0 %v1582_v10  ;;  %1439 = vmatpush3.bf16.msra.mxu1 %v1581_v9  ;;  %v1627_v9 = vld [vmem:[#allocation8 + $0x8] sm:$0xff]   ;;  %v1628_v10 = vld [vmem:[#allocation8 + $0x10] sm:$0xff]  }
  0x75   :  { %1440 = vmatprep.subr.bf16.mxu1 %v1583_v11  ;;  %v1629_v11 = vld [vmem:[#allocation8 + $0x18] sm:$0xff]  }
  0x77   :  { %1419 = vmatpush3.bf16.msra.mxu0 %v1584_v12  ;;  %v1630_v12 = vld [vmem:[#allocation8 + $0x20] sm:$0xff]  }
  0x78   :  { %1420 = vmatprep.subr.bf16.mxu0 %v1586_v14  ;;  %1441 = vmatpush3.bf16.msra.mxu1 %v1585_v13  ;;  %v1631_v13 = vld [vmem:[#allocation8 + $0x28] sm:$0xff]  }
  0x79   :  { %1442 = vmatprep.subr.bf16.mxu1 %v1587_v15  ;;  %v1282_v15 = vld [vmem:[%s1936_s2] ss:$0 sm:$0xff] }
  0x7b   :  { %1421 = vmatpush3.bf16.msra.mxu0 %v1588_v16 }
  0x7c   :  { %1422 = vmatprep.subr.bf16.mxu0 %v1590_v18  ;;  %1443 = vmatpush3.bf16.msra.mxu1 %v1589_v17 }
  0x7d   :  { %1444 = vmatprep.subr.bf16.mxu1 %v1591_v19 }
  0x7f   :  { %1423 = vmatpush3.bf16.msra.mxu0 %v1592_v20 }
  0x80   :  { %1424 = vmatprep.subr.bf16.mxu0 %v1594_v22  ;;  %1445 = vmatpush3.bf16.msra.mxu1 %v1593_v21 }
  0x81   :  { %1446 = vmatprep.subr.bf16.mxu1 %v1595_v23 }
  0x83   :  { %1425 = vmatpush3.bf16.msra.mxu0 %v1596_v24 }
  0x84   :  { %1426 = vmatprep.subr.bf16.mxu0 %v1598_v26  ;;  %1447 = vmatpush3.bf16.msra.mxu1 %v1597_v25 }
  0x85   :  { %1448 = vmatprep.subr.bf16.mxu1 %v1599_v27 }
  0x87   :  { %1427 = vmatpush3.bf16.msra.mxu0 %v1600_v28 }
  0x88   :  { %1428 = vmatprep.subr.bf16.mxu0 %v1602_v30  ;;  %1449 = vmatpush3.bf16.msra.mxu1 %v1601_v29 }
  0x89   :  { %1450 = vmatprep.subr.bf16.mxu1 %v1603_v31 }
  0x8b   :  { %1429 = vmatpush3.bf16.msra.mxu0 %v1604_v32 }
  0x8c   :  { %1451 = vmatpush3.bf16.msra.mxu1 %v1605_v34  ;;  %1476 = vmatprep.subr.bf16.mxu0 %v1761_v1 }
  0x8d   :  { %1496 = vmatprep.subr.bf16.mxu1 %v1761_v1 }
  0x8e   :  { %917 = vmatmul.mubr.bf16.vlgmr.msra.gmra.mrb[4].mxu0 %v279_v61 }
  0x8f   :  { %958 = vmatmul.mubr.bf16.vlgmr.msra.gmra.mrb[4].mxu1 %v281_v63  ;;  %1477 = vmatpush3.bf16.msra.mxu0 %v1618_v0  ;;  %v1763_v0 = vmov 1966171168  }
  0x90   :  { %1478 = vmatprep.subr.bf16.mxu0 %v1761_v1  ;;  %1492 = vmatprep.mubr.msk.bf16.mxu0 %vm1762_vm0, %v1761_v1 }
  0x91   :  { %1512 = vmatprep.mubr.msk.bf16.mxu1 %vm1762_vm0, %v1761_v1  ;;  %1497 = vmatpush3.bf16.msra.mxu1 %v1626_v8 }
  0x92   :  { %1498 = vmatprep.subr.bf16.mxu1 %v1761_v1 }
  0x93   :  { %1479 = vmatpush3.bf16.msra.mxu0 %v1619_v37  ;;  %v1200_v37 = vunpack.c.l.s4 %v1763_v0 }
  0x94   :  { %1480 = vmatprep.subr.bf16.mxu0 %v1761_v1 }
  0x95   :  { %1499 = vmatpush3.bf16.msra.mxu1 %v1627_v9 }
  0x96   :  { %1500 = vmatprep.subr.bf16.mxu1 %v1761_v1 }
  0x97   :  { %1481 = vmatpush3.bf16.msra.mxu0 %v1620_v2  ;;  %v1201_v2 = vunpack.c.0.s8 %v1200_v37 }
  0x98   :  { %1482 = vmatprep.subr.bf16.mxu0 %v1761_v1 }
  0x99   :  { %1501 = vmatpush3.bf16.msra.mxu1 %v1628_v10  ;;  %v1204_v8 = vsub.s32 %v1201_v2, %v1871_v33 }
  0x9a   :  { %1502 = vmatprep.subr.bf16.mxu1 %v1761_v1 }
  0x9b   :  { %1483 = vmatpush3.bf16.msra.mxu0 %v1621_v3 }
  0x9c   :  { %1484 = vmatprep.subr.bf16.mxu0 %v1761_v1 }
  0x9d   :  { %1503 = vmatpush3.bf16.msra.mxu1 %v1629_v11 }
  0x9e   :  { %1504 = vmatprep.subr.bf16.mxu1 %v1761_v1 }
  0x9f   :  { %1485 = vmatpush3.bf16.msra.mxu0 %v1622_v4 }
  0xa0   :  { %1486 = vmatprep.subr.bf16.mxu0 %v1761_v1 }
  0xa1   :  { %1505 = vmatpush3.bf16.msra.mxu1 %v1630_v12 }
  0xa2   :  { %1506 = vmatprep.subr.bf16.mxu1 %v1761_v1 }
  0xa3   :  { %1487 = vmatpush3.bf16.msra.mxu0 %v1623_v5 }
  0xa4   :  { %1488 = vmatprep.subr.bf16.mxu0 %v1761_v1 }
  0xa5   :  { %1507 = vmatpush3.bf16.msra.mxu1 %v1631_v13 }
  0xa6   :  { %1508 = vmatprep.subr.bf16.mxu1 %v1761_v1 }
  0xa7   :  { %1489 = vmatpush3.bf16.msra.mxu0 %v1624_v6 }
  0xa8   :  { %1490 = vmatprep.subr.bf16.mxu0 %v1761_v1 }
  0xa9   :  { %1509 = vmatpush3.bf16.msra.mxu1 %v1632_v52 }
  0xaa   :  { %1510 = vmatprep.subr.bf16.mxu1 %v1761_v1  ;;  %v1356_v1 = vld [vmem:[%s1940_s6] ss:$0 sm:$0xff] }
  0xab   :  { %1491 = vmatpush3.bf16.msra.mxu0 %v1625_v7 }
  0xad   :  { %1511 = vmatpush3.bf16.msra.mxu1 %v1633_v53 }
 0x141   :  { %v1386_v14 = vpop.f32.mrb[0].mxu0 }
 0x142   :  { %v1387_v16 = vpop.f32.mrb[1].mxu0  ;;  %v1408_v17 = vpop.f32.mrb[0].mxu1 }
 0x143   :  { %v1388_v18 = vadd.f32 %v1387_v16, %v1386_v14  ;;  %v1389_v19 = vpop.f32.mrb[2].mxu0  ;;  %v1409_v20 = vpop.f32.mrb[1].mxu1 }
 0x144   :  { %v1390_v21 = vpop.f32.mrb[3].mxu0  ;;  %v1410_v23 = vadd.f32 %v1409_v20, %v1408_v17  ;;  %v1411_v24 = vpop.f32.mrb[2].mxu1 }
 0x145   :  { %v837_v22 = vadd.f32 %v1388_v18, %v1282_v15  ;;  %v1391_v25 = vadd.f32 %v1390_v21, %v1389_v19  ;;  %v1412_v26 = vpop.f32.mrb[3].mxu1 }
 0x146   :  { %v1413_v29 = vadd.f32 %v1412_v26, %v1411_v24 }
 0x147   :  { %v878_v27 = vadd.f32 %v1410_v23, %v837_v22  ;;  %v840_v28 = vadd.f32 %v1391_v25, %v1282_v15 }
 0x149   :  { %v881_v30 = vadd.f32 %v1413_v29, %v840_v28 }
 0x161   :  { %v1430_v31 = vpop.f32.mrb[4].mxu0 }
 0x162   :  { %v1452_v32 = vpop.f32.mrb[4].mxu1  ;;  %v1431_v34 = vpop.f32.mrb[5].mxu0 }
 0x163   :  { %v1432_v35 = vadd.f32 %v1431_v34, %v1430_v31  ;;  %v1453_v36 = vpop.f32.mrb[5].mxu1  ;;  %v1433_v38 = vpop.f32.mrb[6].mxu0 }
 0x164   :  { %v1454_v39 = vadd.f32 %v1453_v36, %v1452_v32  ;;  %v1455_v40 = vpop.f32.mrb[6].mxu1  ;;  %v1434_v41 = vpop.f32.mrb[7].mxu0 }
 0x165   :  { %v919_v42 = vadd.f32 %v1432_v35, %v878_v27  ;;  %v1435_v43 = vadd.f32 %v1434_v41, %v1433_v38  ;;  %v1456_v44 = vpop.f32.mrb[7].mxu1 }
 0x166   :  { %v1457_v45 = vadd.f32 %v1456_v44, %v1455_v40 }
 0x167   :  { %v960_v46 = vadd.f32 %v1454_v39, %v919_v42  ;;  %v922_v47 = vadd.f32 %v1435_v43, %v881_v30 }
 0x169   :  { %v963_v48 = vadd.f32 %v1457_v45, %v922_v47  ;;  %v966_v49 = vmax.f32 %v960_v46, 0.0 }
 0x16b   :  { %v967_v50 = vmax.f32 %v963_v48, 0.0 }
 0x16d   :  { %v968_v51 = vpack.c.bf16 %v967_v50, %v966_v49 }
 0x16f   :  { %1493 = vmatmul.mubr.bf16.vlgmr.msra.gmra.mrb[8].mxu0 %v968_v51 }
 0x242   :  { %v1074_v55 = vpop.f32.mrb[8].mxu0 }
 0x243   :  { %v1075_v56 = vadd.f32 %v1347_v54, %v1074_v55  ;;  %v1494_v57 = vpop.f32.mrb[9].mxu0 }
 0x244   :  { %v1077_v58 = vpop.f32.mrb[10].mxu0 }
 0x245   :  { %v1078_v59 = vadd.f32 %v1347_v54, %v1077_v58  ;;  %v1495_v60 = vpop.f32.mrb[11].mxu0  ;;  %v1081_v61 = vmax.f32 %v1075_v56, 0.0 }
 0x247   :  { %v1082_v62 = vmax.f32 %v1078_v59, 0.0 }
 0x249   :  { %v1083_v63 = vpack.c.bf16 %v1082_v62, %v1081_v61 }
 0x24b   :  { %1513 = vmatmul.mubr.bf16.vlgmr.msra.gmra.mrb[8].mxu1 %v1083_v63 }
 0x31e   :  { %v1189_v3 = vpop.f32.mrb[8].mxu1 }
 0x31f   :  { %v1514_v4 = vpop.f32.mrb[9].mxu1  ;;  %v1190_v6 = vadd.f32 %v1356_v1, %v1189_v3 }
 0x320   :  { %v1192_v5 = vpop.f32.mrb[10].mxu1 }
 0x321   :  { %v1193_v7 = vadd.f32 %v1356_v1, %v1192_v5  ;;  %v1515_v9 = vpop.f32.mrb[11].mxu1 }
 0x323   :  { %v1196_v10 = vpack.c.bf16 %v1193_v7, %v1190_v6  ;;  %v1365_v11 = vpack.c.bf16 %v1193_v7, %v1193_v7 }
 0x325   :  { %v1205_v12 = vrot.slane %v1196_v10, %v1204_v8  ;;  %v1212_v13 = vrot.slane %v1365_v11, %v1204_v8 }
 0x327   :  { %v1213_v14 = vcombine.high %v1205_v12, %v1205_v12  ;;  %v1214_v15 = vcombine.high %v1212_v13, %v1212_v13  ;;  %v1221_v16 = vrot.slane %v1205_v12, %v1204_v8  ;;  %v1228_v17 = vrot.slane %v1212_v13, %v1204_v8  ;;  %1366 = vst.sshfl [vmem:[#allocation10] sm:$0x1 pattern:$0x73625140] %v1205_v12 }
 0x328   :  { %1368 = vst.sshfl [vmem:[#allocation10 + $0x4] sm:$0x1 pattern:$0x73625140] %v1212_v13 }
 0x329   :  { %v1235_v18 = vrot.slane %v1213_v14, %v1204_v8  ;;  %v1242_v19 = vrot.slane %v1214_v15, %v1204_v8  ;;  %v1243_v20 = vcombine.high %v1221_v16, %v1221_v16  ;;  %v1244_v21 = vcombine.high %v1228_v17, %v1228_v17  ;;  %1367 = vst.sshfl [vmem:[#allocation10 + $0x1] sm:$0x1 pattern:$0x73625140] %v1213_v14 }
 0x32a   :  { %1369 = vst.sshfl [vmem:[#allocation10 + $0x5] sm:$0x1 pattern:$0x73625140] %v1214_v15 }
 0x32b   :  { %v1245_v22 = vcombine.high %v1235_v18, %v1235_v18  ;;  %v1246_v23 = vcombine.high %v1242_v19, %v1242_v19  ;;  %1257 = vst [vmem:[#allocation10 + $0x2] sm:$0x1] %v1243_v20  ;;  %1261 = vst [vmem:[#allocation10 + $0x6] sm:$0x1] %v1244_v21 }
 0x32d   :  { %1258 = vst [vmem:[#allocation10 + $0x3] sm:$0x1] %v1245_v22  ;;  %1262 = vst [vmem:[#allocation10 + $0x7] sm:$0x1] %v1246_v23 }
 0x32e   :  { %1267 = vsyncadd [#allocation4], 112  ;;  %s1764_s4 = smov [#allocation10]  }
 0x32f   :  { %s1268_s6 = sshll.u32 %s1764_s4, 4  ;;  %s1269_s6 = int_to_ptr.vmem [resolvable:$true] %s1268_s6 }
 0x330   :  { %s1722_s9 = scalar_lea.vmem %s1269_s6, 16  ;;  %s1726_s10 = scalar_lea.vmem %s1269_s6, 128 }
 0x331   :  { %p1723_p4 = scmp.ne.s32.totalorder %s1269_s6, %s1722_s9  ;;  %p1727_p5 = scmp.lt.s32.totalorder %s1269_s6, %s1269_s6 }
 0x332   :  { %p1728_p6 = scmp.lt.s32.totalorder %s1726_s10, %s1722_s9 }
 0x334   :  { %p1729_p7 = por %p1728_p6, %p1727_p5 }
 0x336   :  { %p1730_p8 = pnand %p1729_p7, %p1723_p4 }
 0x338   :  { %1733 = shalt.err (!%p1730_p8)
}
 0x339   :  { %s1734_s15 = scalar_lea.hbm %s1941_s7, 16 }
 0x33a   :  { %p1735_p9 = scmp.ne.s32.totalorder %s1941_s7, %s1734_s15  ;;  %p1738_p10 = scmp.lt.u32.totalorder %s1734_s15, %s1941_s7 }
 0x33c   :  { %p1740_p11 = pnand %p1738_p10, %p1735_p9 }
 0x33e   :  { %1743 = shalt.err (!%p1740_p11)
}
 0x33f   :  { %s1765_s16 = smov 1  }
 0x340   :  { %1274 = dma.vmem_to_hbm [thread:$0]  %s1269_s6, 16, %s1941_s7, [#allocation4], %s1757_s26, %s1757_s26, %s1765_s16  }
 0x341   :  { %1750 = dma.done.wait [#allocation4], 128  }
 0x342   :  { %1751 = vsyncadd [#allocation4], 4294967168 }
 0x343   :  { %1278 = vsyncpa [#allocation3], 1 }
 0x344   :  { %1279 = vsyncpa [#allocation6], 1 }
 0x345   :  { %1280 = vsyncpa [#allocation9], 1 }
 0x346   :  { %1281 = vsyncpa [#allocation4], 1 }

</bundles_post_ra>
